<compile_context>
chip_gen: v7x
topology: tpu7x:2x2x1
jax: 0.10.0
libtpu: 0.0.40
codegen_flags: <defaults>
</compile_context>

<pallas_src>
import jax
import jax.numpy as jnp
from jax.experimental import pallas as pl
from jax.experimental.pallas import tpu as pltpu

_SUBLANES = 8  # f32 sublane tile height


def _sigmoid_kernel(x_ref, o_ref):
    x = x_ref[...]
    # sigmoid(x) = 0.5 * tanh(0.5 * x) + 0.5  (single EUP op, no VPU divide)
    o_ref[...] = 0.5 * jnp.tanh(0.5 * x) + 0.5


def sigmoid_pallas(x):
    """Elementwise sigmoid on an arbitrary-shaped tensor via one Pallas TPU call."""
    orig_shape = x.shape
    total = x.size

    # Present a sublane-dense 2D slab to the kernel with zero data movement:
    # (8, total//8) when possible (full 8-sublane rows), else a single row.
    if total % _SUBLANES == 0:
        x2d = x.reshape(_SUBLANES, total // _SUBLANES)
    else:
        x2d = x.reshape(1, total)

    itemsize = jnp.dtype(x.dtype).itemsize
    cost = pl.CostEstimate(
        flops=2 * total,                 # the two muls/adds around the tanh
        transcendentals=total,           # one tanh per element
        bytes_accessed=2 * itemsize * total,
    )

    out2d = pl.pallas_call(
        _sigmoid_kernel,
        out_shape=jax.ShapeDtypeStruct(x2d.shape, x2d.dtype),
        in_specs=[pl.BlockSpec(memory_space=pltpu.MemorySpace.VMEM)],
        out_specs=pl.BlockSpec(memory_space=pltpu.MemorySpace.VMEM),
        cost_estimate=cost,
    )(x2d)

    return out2d.reshape(orig_shape)


if __name__ == "__main__":
    key = jax.random.PRNGKey(0)
    # Shape implied by the module's forward: (1, 2904, 1, 1), NCHW.
    x = jax.random.normal(key, (1, 2904, 1, 1), dtype=jnp.float32)

    out = sigmoid_pallas(x)
    jax.block_until_ready(out)

    # Sanity check against the plain-JAX reference.
    ref = jax.nn.sigmoid(x)
    assert out.shape == x.shape and out.dtype == x.dtype
    assert jnp.allclose(out, ref, atol=1e-5, rtol=1e-5)

    print("KERNEL_OK")
</pallas_src>

<mosaic_0001>
module attributes {stable_mosaic.version = 11 : i64} {
  func.func @_sigmoid_kernel(%arg0: memref<8x363xf32, #tpu.memory_space<vmem>>, %arg1: memref<8x363xf32, #tpu.memory_space<vmem>>) attributes {dimension_semantics = [], scalar_prefetch = 0 : i64, scratch_operands = 0 : i64, tpu.core_type = #tpu.core_type<tc>} {
    %c0 = arith.constant 0 : index
    %c0_0 = arith.constant 0 : index
    %0 = vector.load %arg0[%c0, %c0_0] : memref<8x363xf32, #tpu.memory_space<vmem>>, vector<8x363xf32>
    %cst = arith.constant 5.000000e-01 : f32
    %1 = vector.broadcast %cst : f32 to vector<8x363xf32>
    %2 = arith.mulf %1, %0 : vector<8x363xf32>
    %3 = math.tanh %2 : vector<8x363xf32>
    %cst_1 = arith.constant 5.000000e-01 : f32
    %4 = vector.broadcast %cst_1 : f32 to vector<8x363xf32>
    %5 = arith.mulf %4, %3 : vector<8x363xf32>
    %cst_2 = arith.constant 5.000000e-01 : f32
    %6 = vector.broadcast %cst_2 : f32 to vector<8x363xf32>
    %7 = arith.addf %5, %6 : vector<8x363xf32>
    %c0_3 = arith.constant 0 : index
    %c0_4 = arith.constant 0 : index
    %8 = vector.load %arg1[%c0_3, %c0_4] : memref<8x363xf32, #tpu.memory_space<vmem>>, vector<8x363xf32>
    tpu.vector_store %arg1[%c0_3, %c0_4], %7 {strides = array<i32>} : memref<8x363xf32, #tpu.memory_space<vmem>>, vector<8x363xf32>,
    return
  }
}

</mosaic_0001>

<bundles_post_ra>
// kernel: tpu_custom_call.1
= control target key start
LH: loop header
LB: loop body
LE: loop exit
PB: predicated region body
PF: predicated region fallthrough
CT: control target
= control target key end

     0   :  { %6 = vsyncpa [#allocation3], 0  ;;  %s147_s0 = inlined_call_operand.hbm [shape: f32[8,363], index: 0, kind: input, shape index: {}]   ;;  %s148_s1 = inlined_call_operand.hbm [shape: f32[8,363], index: 1, kind: output, shape index: {}]  }
   0x1   :  { %7 = vsyncpa [#allocation4], 0  ;;  %s111_s6 = smov [#allocation2]   ;;  %s63_s10 = scalar_lea.hbm %s147_s0, 384 }
   0x2   :  { %s14_s7 = sshll.u32 %s111_s6, 4  ;;  %p64_p0 = scmp.ne.s32.totalorder %s147_s0, %s63_s10  ;;  %s15_s7 = int_to_ptr.vmem [resolvable:$true] %s14_s7 }
   0x3   :  { %p67_p1 = scmp.lt.u32.totalorder %s63_s10, %s147_s0 }
   0x5   :  { %p69_p2 = pnand %p67_p1, %p64_p0 }
   0x7   :  { %72 = shalt.err (!%p69_p2)
}
   0x8   :  { %s73_s15 = scalar_lea.vmem %s15_s7, 384  ;;  %p78_p4 = scmp.lt.s32.totalorder %s15_s7, %s15_s7 }
   0x9   :  { %p74_p3 = scmp.ne.s32.totalorder %s15_s7, %s73_s15  ;;  %p79_p5 = scmp.lt.s32.totalorder %s73_s15, %s73_s15 }
   0xb   :  { %p80_p6 = por %p79_p5, %p78_p4 }
   0xd   :  { %p81_p7 = pnand %p80_p6, %p74_p3 }
   0xf   :  { %84 = shalt.err (!%p81_p7)
}
  0x10   :  { %17 = dma.hbm_to_vmem [thread:$0]  %s147_s0, 384, %s15_s7, [#allocation3]  }
  0x11   :  { %107 = dma.done.wait [#allocation3], 384  }
  0x12   :  { %108 = vsyncadd [#allocation3], 4294966912  ;;  %v21_v0 = vld [vmem:[#allocation2] sm:$0xff]  ;;  %v22_v1 = vld [vmem:[#allocation2 + $0x8] sm:$0xff]  ;;  %s112_s18 = smov [#allocation5]   ;;  %vm38_vm0 = vcmask 875520  }
  0x13   :  { %v23_v2 = vld [vmem:[#allocation2 + $0x10] sm:$0xff]  ;;  %v24_v3 = vmul.f32 0.5, %v21_v0  ;;  %v25_v4 = vmul.f32 0.5, %v22_v1  ;;  %s46_s19 = sshll.u32 %s112_s18, 4  ;;  %s47_s19 = int_to_ptr.vmem [resolvable:$true] %s46_s19 }
  0x14   :  { %v26_v5 = vmul.f32 0.5, %v23_v2  ;;  %s85_s0 = scalar_lea.vmem %s47_s19, 384  ;;  %p90_p9 = scmp.lt.s32.totalorder %s47_s19, %s47_s19 }
  0x15   :  { %57 = vtanh.f32 %v24_v3  ;;  %p86_p8 = scmp.ne.s32.totalorder %s47_s19, %s85_s0  ;;  %p91_p10 = scmp.lt.s32.totalorder %s85_s0, %s85_s0 }
  0x16   :  { %59 = vtanh.f32 %v25_v4 }
  0x17   :  { %61 = vtanh.f32 %v26_v5  ;;  %p92_p11 = por %p91_p10, %p90_p9 }
  0x19   :  { %p93_p12 = pnand %p92_p11, %p86_p8 }
  0x1f   :  { %v58_v6 = vpop.eup %57 }
  0x20   :  { %v60_v7 = vpop.eup %59  ;;  %v30_v8 = vmul.f32 0.5, %v58_v6 }
  0x21   :  { %v62_v9 = vpop.eup %61  ;;  %v31_v10 = vmul.f32 0.5, %v60_v7 }
  0x22   :  { %v33_v11 = vadd.f32 0.5, %v30_v8  ;;  %v32_v12 = vmul.f32 0.5, %v62_v9 }
  0x23   :  { %v34_v13 = vadd.f32 0.5, %v31_v10 }
  0x24   :  { %36 = vst [vmem:[#allocation5] sm:$0xff] %v33_v11  ;;  %v35_v14 = vadd.f32 0.5, %v32_v12 }
  0x25   :  { %37 = vst [vmem:[#allocation5 + $0x8] sm:$0xff] %v34_v13 }
  0x26   :  { %39 = vst.msk [vmem:[#allocation5 + $0x10] sm:$0xff] %vm38_vm0, %v35_v14 }
  0x27   :  { %96 = shalt.err (!%p93_p12)
}
  0x28   :  { %s97_s22 = scalar_lea.hbm %s148_s1, 384 }
  0x29   :  { %p98_p13 = scmp.ne.s32.totalorder %s148_s1, %s97_s22  ;;  %p101_p0 = scmp.lt.u32.totalorder %s97_s22, %s148_s1 }
  0x2b   :  { %p103_p1 = pnand %p101_p0, %p98_p13 }
  0x2d   :  { %106 = shalt.err (!%p103_p1)
}
  0x2e   :  { %49 = dma.vmem_to_hbm [thread:$0]  %s47_s19, 384, %s148_s1, [#allocation4]  }
  0x2f   :  { %109 = dma.done.wait [#allocation4], 384  }
  0x30   :  { %110 = vsyncadd [#allocation4], 4294966912 }
  0x31   :  { %53 = vsyncpa [#allocation3], 1 }
  0x32   :  { %54 = vsyncpa [#allocation4], 1 }

</bundles_post_ra>
